<compile_context>
chip_gen: v7x
topology: tpu7x:2x2x1
jax: 0.10.0
libtpu: 0.0.40
codegen_flags: <defaults>
</compile_context>

<pallas_src>
import jax
import jax.numpy as jnp
from jax import lax
from jax.experimental import pallas as pl
from jax.experimental.pallas import tpu as pltpu

LN_EPS = 1e-5


# ----------------------------------------------------------------------------
# Patch embedding: tiled (M, K) @ (K, D) matmul, bf16 inputs, f32 accumulate
# ----------------------------------------------------------------------------
def _patch_embed_kernel(x_ref, w_ref, o_ref):
    o_ref[...] = jnp.dot(x_ref[...], w_ref[...],
                         preferred_element_type=jnp.float32)


def patch_embed_matmul(patches2d_bf16, w_bf16, tm=256):
    """Conv2d(kernel=stride=patch, bias=False) as an im2col matmul, tiled over M."""
    M, K = patches2d_bf16.shape
    _, D = w_bf16.shape
    tm = min(tm, M)
    return pl.pallas_call(
        _patch_embed_kernel,
        out_shape=jax.ShapeDtypeStruct((M, D), jnp.float32),
        grid=(pl.cdiv(M, tm),),
        in_specs=[pl.BlockSpec((tm, K), lambda i: (i, 0)),
                  pl.BlockSpec((K, D), lambda i: (0, 0))],
        out_specs=pl.BlockSpec((tm, D), lambda i: (i, 0)),
        compiler_params=pltpu.CompilerParams(dimension_semantics=("parallel",)),
    )(patches2d_bf16, w_bf16)


# ----------------------------------------------------------------------------
# Fused: [cls ; patch-embeds] + position embedding -> pre-LayerNorm
# ----------------------------------------------------------------------------
def _embed_finalize_kernel(emb_ref, cls_ref, pos_ref, w_ref, b_ref, o_ref):
    w = w_ref[...]   # (1, D)
    b = b_ref[...]   # (1, D)

    def _ln_rows(rows):  # per-row LayerNorm (rows independent)
        mu = jnp.mean(rows, axis=-1, keepdims=True)
        var = jnp.mean(jnp.square(rows - mu), axis=-1, keepdims=True)
        return (rows - mu) * lax.rsqrt(var + LN_EPS) * w + b

    n_patch = emb_ref.shape[1]
    # row 0: class token + its position embedding
    o_ref[0, pl.ds(0, 1), :] = _ln_rows(cls_ref[0] + pos_ref[0, pl.ds(0, 1), :])
    # rows 1..N-1: patch embeddings + their position embeddings
    o_ref[0, pl.ds(1, n_patch), :] = _ln_rows(
        emb_ref[0] + pos_ref[0, pl.ds(1, n_patch), :])


def embed_finalize(emb, class_emb, pos_emb, ln_w, ln_b):
    BT, P, D = emb.shape
    N = P + 1
    return pl.pallas_call(
        _embed_finalize_kernel,
        out_shape=jax.ShapeDtypeStruct((BT, N, D), jnp.float32),
        grid=(BT,),
        in_specs=[pl.BlockSpec((1, P, D), lambda i: (i, 0, 0)),
                  pl.BlockSpec((1, 1, D), lambda i: (0, 0, 0)),
                  pl.BlockSpec((1, N, D), lambda i: (0, 0, 0)),
                  pl.BlockSpec((1, D), lambda i: (0, 0)),
                  pl.BlockSpec((1, D), lambda i: (0, 0))],
        out_specs=pl.BlockSpec((1, N, D), lambda i: (i, 0, 0)),
        compiler_params=pltpu.CompilerParams(dimension_semantics=("parallel",)),
    )(emb, class_emb, pos_emb, ln_w, ln_b)


# ----------------------------------------------------------------------------
# Fused CLIP encoder layer kernel
# ----------------------------------------------------------------------------
def _make_clip_layer_kernel(num_heads, head_dim, hidden):
    scale = head_dim ** -0.5
    D = hidden

    def kernel(x_ref, ln1w, ln1b, wqkv, bqkv, wo, bo,
               ln2w, ln2b, w1, b1, w2, b2, o_ref, attn_scratch):
        x = x_ref[0]  # (N, D) f32 residual stream

        # --- LayerNorm 1 (f32 stats) ---
        mu = jnp.mean(x, axis=-1, keepdims=True)
        var = jnp.mean(jnp.square(x - mu), axis=-1, keepdims=True)
        h = (x - mu) * lax.rsqrt(var + LN_EPS) * ln1w[...] + ln1b[...]

        # --- fused QKV projection: one bf16 MXU matmul, f32 accumulate ---
        qkv = jnp.dot(h.astype(jnp.bfloat16), wqkv[...],
                      preferred_element_type=jnp.float32) + bqkv[...]
        q = (qkv[:, :D] * scale).astype(jnp.bfloat16)   # HF CLIP: scale after bias
        k = qkv[:, D:2 * D].astype(jnp.bfloat16)
        v = qkv[:, 2 * D:].astype(jnp.bfloat16)

        # --- per-head attention; outputs written straight into a VMEM scratch slab
        #     (no per-head output list, no concatenate) ---
        for hh in range(num_heads):
            sl = slice(hh * head_dim, (hh + 1) * head_dim)
            qh, kh, vh = q[:, sl], k[:, sl], v[:, sl]
            # scores[n, m] = sum_d qh[n, d] * kh[m, d]
            s = lax.dot_general(qh, kh, (((1,), (1,)), ((), ())),
                                preferred_element_type=jnp.float32)
            s = s - jnp.max(s, axis=-1, keepdims=True)
            p = jnp.exp(s)
            p = p * pl.reciprocal(jnp.sum(p, axis=-1, keepdims=True), approx=True)
            attn_scratch[:, sl] = jnp.dot(p.astype(jnp.bfloat16), vh,
                                          preferred_element_type=jnp.float32)

        attn = jnp.dot(attn_scratch[...].astype(jnp.bfloat16), wo[...],
                       preferred_element_type=jnp.float32) + bo[...]
        x = x + attn

        # --- LayerNorm 2 + quickGELU MLP (elementwise math in f32) ---
        mu2 = jnp.mean(x, axis=-1, keepdims=True)
        var2 = jnp.mean(jnp.square(x - mu2), axis=-1, keepdims=True)
        h2 = (x - mu2) * lax.rsqrt(var2 + LN_EPS) * ln2w[...] + ln2b[...]
        f = jnp.dot(h2.astype(jnp.bfloat16), w1[...],
                    preferred_element_type=jnp.float32) + b1[...]
        f = f * jax.nn.sigmoid(1.702 * f)   # quick_gelu
        f = jnp.dot(f.astype(jnp.bfloat16), w2[...],
                    preferred_element_type=jnp.float32) + b2[...]
        o_ref[0] = x + f

    return kernel


def build_clip_layer_call(BT, N, D, mlp, num_heads, head_dim, *,
                          single_buffer_weights=True):
    kernel = _make_clip_layer_kernel(num_heads, head_dim, D)

    if single_buffer_weights:
        # Weights/biases have constant index maps -> a single VMEM buffer suffices
        # (halves weight VMEM vs. default double-buffering; needed at real CLIP
        #  sizes on v7x's 64 MiB VMEM).
        w_kwargs = dict(pipeline_mode=pl.Buffered(1))
    else:
        w_kwargs = {}

    def wspec(shape):
        return pl.BlockSpec(shape, lambda i: (0,) * len(shape), **w_kwargs)

    param_shapes = [
        (1, D), (1, D),           # ln1 gamma/beta          (f32)
        (D, 3 * D), (1, 3 * D),   # fused qkv weight (bf16) / bias (f32)
        (D, D), (1, D),           # out proj                (bf16 / f32)
        (1, D), (1, D),           # ln2 gamma/beta          (f32)
        (D, mlp), (1, mlp),       # fc1                     (bf16 / f32)
        (mlp, D), (1, D),         # fc2                     (bf16 / f32)
    ]

    # Rough per-layer VMEM budget: bf16 weights + f32 biases (+2x headroom in case
    # they end up double-buffered), pipelined activation tiles, and slack.
    weight_bytes = 2 * (3 * D * D + D * D + 2 * D * mlp)
    bias_bytes = 4 * (3 * D + mlp + 6 * D)
    act_bytes = 4 * N * D
    vmem_limit = int(max(32 << 20,
                         min(100 << 20,
                             2 * (weight_bytes + bias_bytes) + 16 * act_bytes + (4 << 20))))

    return pl.pallas_call(
        kernel,
        out_shape=jax.ShapeDtypeStruct((BT, N, D), jnp.float32),
        grid=(BT,),
        in_specs=[pl.BlockSpec((1, N, D), lambda i: (i, 0, 0))]
                 + [wspec(s) for s in param_shapes],
        out_specs=pl.BlockSpec((1, N, D), lambda i: (i, 0, 0)),
        scratch_shapes=[pltpu.VMEM((N, D), jnp.float32)],
        compiler_params=pltpu.CompilerParams(
            dimension_semantics=("parallel",),
            vmem_limit_bytes=vmem_limit),
    )


# ----------------------------------------------------------------------------
# Synthetic CLIP vision tower config / params
# ----------------------------------------------------------------------------
class Config:
    channels = 3
    image_size = 32
    patch_size = 8
    hidden = 128      # lane-dense (multiple of 128)
    heads = 4
    mlp = 512
    layers = 12       # >= 11 so select_layer_list=[-11, -1] is valid


def init_params(key, cfg):
    D = cfg.hidden
    K = cfg.channels * cfg.patch_size * cfg.patch_size
    grid = cfg.image_size // cfg.patch_size
    num_pos = grid * grid + 1
    n_keys = 3 + cfg.layers * 4
    keys = jax.random.split(key, n_keys)
    kit = iter(range(n_keys))
    bf16 = jnp.bfloat16

    def nrm(shape, dtype=jnp.float32):
        return (0.02 * jax.random.normal(keys[next(kit)], shape)).astype(dtype)

    params = {
        "patch_w": nrm((K, D), bf16),                  # conv weight flattened (bias=False)
        "class_emb": nrm((1, 1, D)),
        "pos_emb": nrm((1, num_pos, D)),
        "pre_ln_w": jnp.ones((1, D), jnp.float32),
        "pre_ln_b": jnp.zeros((1, D), jnp.float32),
        "layers": [],
    }
    for _ in range(cfg.layers):
        lp = [
            jnp.ones((1, D), jnp.float32), jnp.zeros((1, D), jnp.float32),     # ln1
            nrm((D, 3 * D), bf16), jnp.zeros((1, 3 * D), jnp.float32),         # fused qkv
            nrm((D, D), bf16), jnp.zeros((1, D), jnp.float32),                 # out proj
            jnp.ones((1, D), jnp.float32), jnp.zeros((1, D), jnp.float32),     # ln2
            nrm((D, cfg.mlp), bf16), jnp.zeros((1, cfg.mlp), jnp.float32),     # fc1
            nrm((cfg.mlp, D), bf16), jnp.zeros((1, D), jnp.float32),           # fc2
        ]
        params["layers"].append(lp)
    return params


# ----------------------------------------------------------------------------
# VisualEncoder.forward
# ----------------------------------------------------------------------------
def visual_encoder_forward(video, params, cfg,
                           select_layer_list=(-11, -1), select_feature="patch"):
    b, t, c, h, w = video.shape
    p = cfg.patch_size
    gh, gw = h // p, w // p
    BT = b * t
    D = cfg.hidden
    x = video.reshape(BT, c, h, w).astype(jnp.float32)

    # -- patch extraction (glue) ~ Conv2d(kernel=stride=patch) im2col --
    patches = x.reshape(BT, c, gh, p, gw, p)
    patches = patches.transpose(0, 2, 4, 1, 3, 5).reshape(BT * gh * gw, c * p * p)
    patches = patches.astype(jnp.bfloat16)

    # -- patch embedding matmul (Pallas, tiled over M) --
    emb = patch_embed_matmul(patches, params["patch_w"])
    emb = emb.reshape(BT, gh * gw, D)

    # -- fused cls-concat + pos-add + pre-LayerNorm (Pallas) --
    hstate = embed_finalize(emb, params["class_emb"], params["pos_emb"],
                            params["pre_ln_w"], params["pre_ln_b"])

    N = gh * gw + 1
    head_dim = D // cfg.heads

    def run_layers(layer_call):
        # hidden_states[0] is the encoder input, then one per layer (HF semantics).
        # TODO(synk): input_output_aliases={0: 0} would update hstate in place, but we
        # must retain intermediate hidden_states here for feature_select.
        states = [hstate]
        s = hstate
        for lp in params["layers"]:
            s = layer_call(s, *lp)
            states.append(s)
        return states

    try:
        hidden_states = run_layers(build_clip_layer_call(
            BT, N, D, cfg.mlp, cfg.heads, head_dim, single_buffer_weights=True))
    except Exception:
        # pl.Buffered(1) on constant-index weight specs not supported by this
        # jax build -- fall back to default (double-buffered) weight specs.
        hidden_states = run_layers(build_clip_layer_call(
            BT, N, D, cfg.mlp, cfg.heads, head_dim, single_buffer_weights=False))

    # -- feature_select + reshape (b*t, n, d) -> (b, t*n, d) (glue) --
    features = []
    for lyr in select_layer_list:
        feat = hidden_states[lyr]
        if select_feature == "patch":
            feat = feat[:, 1:]
        elif select_feature == "cls_patch":
            pass
        else:
            raise ValueError(f"Unexpected select feature: {select_feature}")
        bt, n, d = feat.shape
        features.append(feat.reshape(b, t * n, d))
    return features


if __name__ == "__main__":
    cfg = Config()
    key = jax.random.PRNGKey(0)
    pkey, vkey = jax.random.split(key)
    params = init_params(pkey, cfg)

    b, t = 2, 2
    video = jax.random.normal(
        vkey, (b, t, cfg.channels, cfg.image_size, cfg.image_size), jnp.float32)

    feats = visual_encoder_forward(video, params, cfg)
    feats = jax.block_until_ready(feats)

    n_patches = (cfg.image_size // cfg.patch_size) ** 2
    assert len(feats) == 2
    for f in feats:
        assert f.shape == (b, t * n_patches, cfg.hidden), f.shape
        assert f.dtype == jnp.float32
        assert bool(jnp.all(jnp.isfinite(f)))
    print("KERNEL_OK")
</pallas_src>

<mosaic_0001>
module attributes {stable_mosaic.version = 11 : i64} {
  func.func @_patch_embed_kernel(%arg0: i32, %arg1: memref<64x192xbf16, #tpu.memory_space<vmem>>, %arg2: memref<192x128xbf16, #tpu.memory_space<vmem>>, %arg3: memref<64x128xf32, #tpu.memory_space<vmem>>) attributes {dimension_semantics = [#tpu.dimension_semantics<parallel>], iteration_bounds = array<i64: 1>, scalar_prefetch = 0 : i64, scratch_operands = 0 : i64, tpu.core_type = #tpu.core_type<tc>, window_params = [{transform_indices = @transform_0, window_bounds = array<i64: 64, 192>}, {pipeline_mode = #tpu.pipeline_mode<synchronous>, transform_indices = @transform_1, window_bounds = array<i64: 192, 128>}, {transform_indices = @transform_2, window_bounds = array<i64: 64, 128>}]} {
    %c0 = arith.constant 0 : index
    %c0_0 = arith.constant 0 : index
    %0 = vector.load %arg1[%c0, %c0_0] : memref<64x192xbf16, #tpu.memory_space<vmem>>, vector<64x192xbf16>
    %c0_1 = arith.constant 0 : index
    %c0_2 = arith.constant 0 : index
    %1 = vector.load %arg2[%c0_1, %c0_2] : memref<192x128xbf16, #tpu.memory_space<vmem>>, vector<192x128xbf16>
    %cst = arith.constant dense<0.000000e+00> : vector<64x128xf32>
    %2 = tpu.matmul %0, %1, %cst {dimension_numbers = #tpu.dot_dimension_numbers<[1], [0], [0], [1], [0, 0, 1, 1], [], []>} : vector<64x192xbf16>, vector<192x128xbf16>, vector<64x128xf32> -> vector<64x128xf32>
    %c0_3 = arith.constant 0 : index
    %c0_4 = arith.constant 0 : index
    %3 = vector.load %arg3[%c0_3, %c0_4] : memref<64x128xf32, #tpu.memory_space<vmem>>, vector<64x128xf32>
    tpu.vector_store %arg3[%c0_3, %c0_4], %2 {strides = array<i32>} : memref<64x128xf32, #tpu.memory_space<vmem>>, vector<64x128xf32>,
    return
  }
  func.func @transform_0(%arg0: i32) -> (i32, i32) {
    %c0_i32 = arith.constant 0 : i32
    %c0_i32_0 = arith.constant 0 : i32
    return %arg0, %c0_i32 : i32, i32
  }
  func.func @transform_1(%arg0: i32) -> (i32, i32) {
    %c0_i32 = arith.constant 0 : i32
    %c0_i32_0 = arith.constant 0 : i32
    %c0_i32_1 = arith.constant 0 : i32
    return %c0_i32, %c0_i32_0 : i32, i32
  }
  func.func @transform_2(%arg0: i32) -> (i32, i32) {
    %c0_i32 = arith.constant 0 : i32
    %c0_i32_0 = arith.constant 0 : i32
    return %arg0, %c0_i32 : i32, i32
  }
}

</mosaic_0001>

<bundles_post_ra>
// kernel: tpu_custom_call.1
= control target key start
LH: loop header
LB: loop body
LE: loop exit
PB: predicated region body
PF: predicated region fallthrough
CT: control target
= control target key end

     0   :  { %7 = vsyncpa [#allocation3], 0  ;;  %s506_s0 = inlined_call_operand.hbm [shape: bf16[64,192], index: 0, kind: input, shape index: {}]   ;;  %s507_s1 = inlined_call_operand.hbm [shape: bf16[192,128], index: 1, kind: input, shape index: {}]   ;;  %s508_s2 = inlined_call_operand.hbm [shape: f32[64,128], index: 2, kind: output, shape index: {}]  }
   0x1   :  { %8 = vsyncpa [#allocation6], 0 }
   0x2   :  { %9 = vsyncpa [#allocation4], 0  ;;  %s437_s9 = smov [#allocation2]   ;;  %s365_s13 = scalar_lea.hbm %s506_s0, 1024 }
   0x3   :  { %s15_s10 = sshll.u32 %s437_s9, 4  ;;  %p366_p0 = scmp.ne.s32.totalorder %s506_s0, %s365_s13  ;;  %s16_s10 = int_to_ptr.vmem [resolvable:$true] %s15_s10 }
   0x4   :  { %p369_p1 = scmp.lt.u32.totalorder %s365_s13, %s506_s0 }
   0x6   :  { %p371_p2 = pnand %p369_p1, %p366_p0 }
   0x8   :  { %374 = shalt.err (!%p371_p2)
}
   0x9   :  { %s375_s18 = scalar_lea.vmem %s16_s10, 1024  ;;  %p380_p4 = scmp.lt.s32.totalorder %s16_s10, %s16_s10 }
   0xa   :  { %p376_p3 = scmp.ne.s32.totalorder %s16_s10, %s375_s18  ;;  %p381_p5 = scmp.lt.s32.totalorder %s375_s18, %s375_s18 }
   0xc   :  { %p382_p6 = por %p381_p5, %p380_p4 }
   0xe   :  { %p383_p7 = pnand %p382_p6, %p376_p3 }
  0x10   :  { %386 = shalt.err (!%p383_p7)
}
  0x11   :  { %s438_s19 = smov 128   ;;  %s439_s20 = smov 8  }
  0x12   :  { %21 = dma.hbm_to_vmem [thread:$0]  %s506_s0, 1024, %s16_s10, [#allocation3], %s438_s19, %s438_s19, %s439_s20  }
  0x13   :  { %s440_s23 = smov [#allocation5]   ;;  %s387_s27 = scalar_lea.hbm %s507_s1, 1536 }
  0x14   :  { %s27_s24 = sshll.u32 %s440_s23, 4  ;;  %p388_p8 = scmp.ne.s32.totalorder %s507_s1, %s387_s27  ;;  %s28_s24 = int_to_ptr.vmem [resolvable:$true] %s27_s24 }
  0x15   :  { %p391_p9 = scmp.lt.u32.totalorder %s387_s27, %s507_s1 }
  0x17   :  { %p393_p10 = pnand %p391_p9, %p388_p8 }
  0x19   :  { %396 = shalt.err (!%p393_p10)
}
  0x1a   :  { %s397_s4 = scalar_lea.vmem %s28_s24, 1536  ;;  %p402_p12 = scmp.lt.s32.totalorder %s28_s24, %s28_s24 }
  0x1b   :  { %p398_p11 = scmp.ne.s32.totalorder %s28_s24, %s397_s4  ;;  %p403_p13 = scmp.lt.s32.totalorder %s397_s4, %s397_s4 }
  0x1d   :  { %p404_p0 = por %p403_p13, %p402_p12 }
  0x1f   :  { %p405_p1 = pnand %p404_p0, %p398_p11 }
  0x21   :  { %408 = shalt.err (!%p405_p1)
}
  0x22   :  { %s441_s0 = smov 64   ;;  %s442_s5 = smov 4  }
  0x23   :  { %33 = dma.hbm_to_vmem [thread:$0]  %s507_s1, 1536, %s28_s24, [#allocation6], %s441_s0, %s441_s0, %s442_s5  }
  0x24   :  { %431 = dma.done.wait [#allocation3], 1024  }
  0x25   :  { %432 = vsyncadd [#allocation3], 4294966272 }
  0x26   :  { %433 = dma.done.wait [#allocation6], 1536  }
  0x27   :  { %434 = vsyncadd [#allocation6], 4294965760  ;;  %v443_v0 = vmov 0   ;;  %v341_v1 = vld [vmem:[#allocation5] sm:$0xff]   ;;  %v342_v2 = vld [vmem:[#allocation5 + $0x8] sm:$0xff]   ;;  %vm181_vm0 = vcmask 523264  }
  0x28   :  { %194 = vmatprep.subr.bf16.mxu0 %v443_v0  ;;  %309 = vmatprep.subr.bf16.mxu1 %v443_v0  ;;  %v343_v3 = vld [vmem:[#allocation5 + $0x10] sm:$0xff]   ;;  %v344_v4 = vld [vmem:[#allocation5 + $0x18] sm:$0xff]   ;;  %v355_v5 = vld [vmem:[#allocation2 + $0x4] ss:$8 sps:$4 sm:$0xff]   ;;  %s444_s1 = smov [#allocation7]  }
  0x29   :  { %195 = vmatpush1.bf16.msra.mxu0 %v341_v1  ;;  %321 = vmatpush1.bf16.msra.mxu1 %v341_v1  ;;  %v345_v6 = vld [vmem:[#allocation5 + $0x20] sm:$0xff]   ;;  %v346_v8 = vld [vmem:[#allocation5 + $0x28] sm:$0xff]   ;;  %v347_v9 = vld [vmem:[#allocation5 + $0x30] sm:$0xff]   ;;  %s272_s8 = sshll.u32 %s444_s1, 4  ;;  %s273_s8 = int_to_ptr.vmem [resolvable:$true] %s272_s8 }
  0x2a   :  { %196 = vmatprep.subr.bf16.mxu0 %v443_v0  ;;  %310 = vmatprep.subr.bf16.mxu1 %v443_v0  ;;  %v358_v7 = vld [vmem:[#allocation2 + $0x24] ss:$8 sps:$4 sm:$0xff]   ;;  %v348_v10 = vld [vmem:[#allocation5 + $0x38] sm:$0xff]   ;;  %v351_v13 = vld [vmem:[#allocation5 + $0x50] sm:$0xff]   ;;  %s409_s9 = scalar_lea.vmem %s273_s8, 1024  ;;  %p414_p3 = scmp.lt.s32.totalorder %s273_s8, %s273_s8 }
  0x2b   :  { %305 = vmatprep.mubr.msk.bf16.mxu0 %vm181_vm0, %v355_v5  ;;  %307 = vmatprep.mubr.msk.bf16.mxu1 %vm181_vm0, %v358_v7  ;;  %v349_v11 = vld [vmem:[#allocation5 + $0x40] sm:$0xff]   ;;  %v350_v12 = vld [vmem:[#allocation5 + $0x48] sm:$0xff]   ;;  %v352_v14 = vld [vmem:[#allocation5 + $0x58] sm:$0xff]   ;;  %p410_p2 = scmp.ne.s32.totalorder %s273_s8, %s409_s9  ;;  %p415_p4 = scmp.lt.s32.totalorder %s409_s9, %s409_s9 }
  0x2c   :  { %v353_v15 = vld [vmem:[#allocation2] ss:$8 sps:$4 sm:$0xff]   ;;  %v359_v17 = vld [vmem:[#allocation2 + $0x14] ss:$8 sps:$4 sm:$0xff]   ;;  %v363_v19 = vld [vmem:[#allocation2 + $0x10] ss:$8 sps:$4 sm:$0xff]  }
  0x2d   :  { %197 = vmatpush1.bf16.msra.mxu0 %v342_v2  ;;  %322 = vmatpush1.bf16.msra.mxu1 %v342_v2  ;;  %v356_v16 = vld [vmem:[#allocation2 + $0x20] ss:$8 sps:$4 sm:$0xff]   ;;  %v361_v18 = vld [vmem:[#allocation2 + $0x34] ss:$8 sps:$4 sm:$0xff]   ;;  %v364_v20 = vld [vmem:[#allocation2 + $0x30] ss:$8 sps:$4 sm:$0xff]   ;;  %p416_p5 = por %p415_p4, %p414_p3 }
  0x2e   :  { %198 = vmatprep.subr.bf16.mxu0 %v443_v0  ;;  %311 = vmatprep.subr.bf16.mxu1 %v443_v0 }
  0x2f   :  { %p417_p6 = pnand %p416_p5, %p410_p2 }
  0x31   :  { %199 = vmatpush1.bf16.msra.mxu0 %v343_v3  ;;  %323 = vmatpush1.bf16.msra.mxu1 %v343_v3 }
  0x32   :  { %200 = vmatprep.subr.bf16.mxu0 %v443_v0  ;;  %312 = vmatprep.subr.bf16.mxu1 %v443_v0 }
  0x35   :  { %201 = vmatpush1.bf16.msra.mxu0 %v344_v4  ;;  %324 = vmatpush1.bf16.msra.mxu1 %v344_v4 }
  0x36   :  { %202 = vmatprep.subr.bf16.mxu0 %v443_v0  ;;  %313 = vmatprep.subr.bf16.mxu1 %v443_v0 }
  0x39   :  { %203 = vmatpush1.bf16.msra.mxu0 %v345_v6  ;;  %325 = vmatpush1.bf16.msra.mxu1 %v345_v6 }
  0x3a   :  { %204 = vmatprep.subr.bf16.mxu0 %v443_v0  ;;  %314 = vmatprep.subr.bf16.mxu1 %v443_v0 }
  0x3d   :  { %205 = vmatpush1.bf16.msra.mxu0 %v346_v8  ;;  %326 = vmatpush1.bf16.msra.mxu1 %v346_v8 }
  0x3e   :  { %206 = vmatprep.subr.bf16.mxu0 %v443_v0  ;;  %315 = vmatprep.subr.bf16.mxu1 %v443_v0 }
  0x41   :  { %207 = vmatpush1.bf16.msra.mxu0 %v347_v9  ;;  %327 = vmatpush1.bf16.msra.mxu1 %v347_v9 }
  0x42   :  { %208 = vmatprep.subr.bf16.mxu0 %v443_v0  ;;  %316 = vmatprep.subr.bf16.mxu1 %v443_v0 }
  0x45   :  { %209 = vmatpush1.bf16.msra.mxu0 %v348_v10  ;;  %328 = vmatpush1.bf16.msra.mxu1 %v348_v10 }
  0x46   :  { %210 = vmatprep.subr.bf16.mxu0 %v443_v0  ;;  %317 = vmatprep.subr.bf16.mxu1 %v443_v0 }
  0x49   :  { %211 = vmatpush1.bf16.msra.mxu0 %v349_v11  ;;  %329 = vmatpush1.bf16.msra.mxu1 %v349_v11 }
  0x4a   :  { %212 = vmatprep.subr.bf16.mxu0 %v443_v0  ;;  %318 = vmatprep.subr.bf16.mxu1 %v443_v0 }
  0x4d   :  { %213 = vmatpush1.bf16.msra.mxu0 %v350_v12  ;;  %330 = vmatpush1.bf16.msra.mxu1 %v350_v12 }
  0x4e   :  { %214 = vmatprep.subr.bf16.mxu0 %v443_v0  ;;  %319 = vmatprep.subr.bf16.mxu1 %v443_v0 }
  0x51   :  { %215 = vmatpush1.bf16.msra.mxu0 %v351_v13  ;;  %331 = vmatpush1.bf16.msra.mxu1 %v351_v13 }
  0x52   :  { %216 = vmatprep.subr.bf16.mxu0 %v443_v0  ;;  %320 = vmatprep.subr.bf16.mxu1 %v443_v0 }
  0x55   :  { %217 = vmatpush1.bf16.msra.mxu0 %v352_v14  ;;  %332 = vmatpush1.bf16.msra.mxu1 %v352_v14 }
  0x58   :  { %227 = vmatmul.mubr.bf16.vlgmr.msra.gmra.mrb[0].mxu0 %v353_v15  ;;  %243 = vmatmul.mubr.bf16.vlgmr.msra.gmra.mrb[0].mxu1 %v356_v16 }
  0x59   :  { %306 = vmatprep.mubr.msk.bf16.mxu0 %vm181_vm0, %v359_v17  ;;  %308 = vmatprep.mubr.msk.bf16.mxu1 %vm181_vm0, %v361_v18 }
  0x60   :  { %235 = vmatmul.mubr.bf16.gmra.mrb[4].mxu0 %v363_v19  ;;  %251 = vmatmul.mubr.bf16.gmra.mrb[4].mxu1 %v364_v20 }
 0x12b   :  { %v228_v21 = vpop.f32.mrb[0].mxu0  ;;  %v244_v22 = vpop.f32.mrb[0].mxu1 }
 0x12c   :  { %259 = vst [vmem:[#allocation7] sm:$0xff] %v228_v21  ;;  %263 = vst [vmem:[#allocation7 + $0x20] sm:$0xff] %v244_v22  ;;  %v230_v23 = vpop.f32.mrb[1].mxu0  ;;  %v246_v24 = vpop.f32.mrb[1].mxu1 }
 0x12d   :  { %v231_v25 = vpop.f32.mrb[2].mxu0  ;;  %v247_v26 = vpop.f32.mrb[2].mxu1 }
 0x12e   :  { %260 = vst [vmem:[#allocation7 + $0x8] sm:$0xff] %v231_v25  ;;  %264 = vst [vmem:[#allocation7 + $0x28] sm:$0xff] %v247_v26  ;;  %v233_v27 = vpop.f32.mrb[3].mxu0  ;;  %v249_v28 = vpop.f32.mrb[3].mxu1 }
 0x133   :  { %v236_v29 = vpop.f32.mrb[4].mxu0  ;;  %v252_v30 = vpop.f32.mrb[4].mxu1 }
 0x134   :  { %261 = vst [vmem:[#allocation7 + $0x10] sm:$0xff] %v236_v29  ;;  %265 = vst [vmem:[#allocation7 + $0x30] sm:$0xff] %v252_v30  ;;  %v238_v31 = vpop.f32.mrb[5].mxu0  ;;  %v254_v32 = vpop.f32.mrb[5].mxu1 }
 0x135   :  { %v239_v33 = vpop.f32.mrb[6].mxu0  ;;  %v255_v34 = vpop.f32.mrb[6].mxu1 }
 0x136   :  { %262 = vst [vmem:[#allocation7 + $0x18] sm:$0xff] %v239_v33  ;;  %266 = vst [vmem:[#allocation7 + $0x38] sm:$0xff] %v255_v34  ;;  %v241_v35 = vpop.f32.mrb[7].mxu0  ;;  %v257_v36 = vpop.f32.mrb[7].mxu1 }
 0x137   :  { %420 = shalt.err (!%p417_p6)
}
 0x138   :  { %s421_s12 = scalar_lea.hbm %s508_s2, 1024 }
 0x139   :  { %p422_p7 = scmp.ne.s32.totalorder %s508_s2, %s421_s12  ;;  %p425_p8 = scmp.lt.u32.totalorder %s421_s12, %s508_s2 }
 0x13b   :  { %p427_p9 = pnand %p425_p8, %p422_p7 }
 0x13d   :  { %430 = shalt.err (!%p427_p9)
}
 0x13e   :  { %278 = dma.vmem_to_hbm [thread:$0]  %s273_s8, 1024, %s508_s2, [#allocation4], %s438_s19, %s438_s19, %s439_s20  }
 0x13f   :  { %435 = dma.done.wait [#allocation4], 1024  }
 0x140   :  { %436 = vsyncadd [#allocation4], 4294966272 }
 0x141   :  { %282 = vsyncpa [#allocation3], 1 }
 0x142   :  { %283 = vsyncpa [#allocation6], 1 }
 0x143   :  { %284 = vsyncpa [#allocation4], 1 }

</bundles_post_ra>
